<compile_context>
chip_gen: v6e
topology: v6e:2x2x1
jax: 0.10.0
libtpu: 0.0.40
codegen_flags: <defaults>
</compile_context>

<pallas_src>
import functools

import jax
import jax.numpy as jnp
from jax.experimental import pallas as pl
from jax.experimental.pallas import tpu as pltpu

HIDDEN = 128
IN_DIM = 16
OUT_DIM = 8


def qnet_kernel(x_ref, w1_ref, b1_ref, w2_ref, b2_ref, w3_ref, b3_ref, o_ref):
    # x_ref: (TB, 16) bf16; weights bf16 (in, out); biases f32 (1, out)
    x = x_ref[...]

    # fc1 + relu (f32 accumulate, f32 epilogue)
    h1 = jnp.dot(x, w1_ref[...], preferred_element_type=jnp.float32)
    h1 = jnp.maximum(h1 + b1_ref[...], 0.0)

    # fc2 + relu  (the MXU-binding matmul)
    h2 = jnp.dot(h1.astype(jnp.bfloat16), w2_ref[...],
                 preferred_element_type=jnp.float32)
    h2 = jnp.maximum(h2 + b2_ref[...], 0.0)

    # fc3 (lane-dense: padded to 128 output columns, no activation)
    out = jnp.dot(h2.astype(jnp.bfloat16), w3_ref[...],
                  preferred_element_type=jnp.float32)
    o_ref[...] = (out + b3_ref[...]).astype(o_ref.dtype)


@functools.partial(jax.jit, static_argnames=("tb",))
def qnet_forward(x, params, *, tb=1024):
    """x: (B, 16) f32/bf16.  params: f32 (in,out) weights + (1,out) biases."""
    w1, b1, w2, b2, w3, b3 = params
    B = x.shape[0]

    # Tile size: multiple of 8, don't over-pad tiny batches, cap at `tb`.
    tile = min(tb, max(8, ((B + 7) // 8) * 8))
    n_blocks = pl.cdiv(B, tile)
    B_pad = n_blocks * tile
    if B_pad != B:
        x = jnp.pad(x, ((0, B_pad - B), (0, 0)))

    # bf16 MXU inputs; biases stay f32 for the f32 epilogue.
    x_bf = x.astype(jnp.bfloat16)
    w1_bf = w1.astype(jnp.bfloat16)
    w2_bf = w2.astype(jnp.bfloat16)
    # Lane-dense fc3: zero-pad (128, 8) -> (128, 128), (1, 8) -> (1, 128).
    w3_bf = jnp.pad(w3, ((0, 0), (0, HIDDEN - OUT_DIM))).astype(jnp.bfloat16)
    b3_pad = jnp.pad(b3, ((0, 0), (0, HIDDEN - OUT_DIM)))

    resident = lambda i: (0, 0)  # weights/biases: same block every grid step
    out_padded = pl.pallas_call(
        qnet_kernel,
        out_shape=jax.ShapeDtypeStruct((B_pad, HIDDEN), jnp.float32),
        grid=(n_blocks,),
        in_specs=[
            pl.BlockSpec((tile, IN_DIM), lambda i: (i, 0)),     # x tile
            pl.BlockSpec((IN_DIM, HIDDEN), resident),           # w1
            pl.BlockSpec((1, HIDDEN), resident),                # b1
            pl.BlockSpec((HIDDEN, HIDDEN), resident),           # w2
            pl.BlockSpec((1, HIDDEN), resident),                # b2
            pl.BlockSpec((HIDDEN, HIDDEN), resident),           # w3 (padded)
            pl.BlockSpec((1, HIDDEN), resident),                # b3 (padded)
        ],
        out_specs=pl.BlockSpec((tile, HIDDEN), lambda i: (i, 0)),
        compiler_params=pltpu.CompilerParams(
            dimension_semantics=("parallel",),
        ),
    )(x_bf, w1_bf, b1, w2_bf, b2, w3_bf, b3_pad)

    return out_padded[:B, :OUT_DIM]


def init_params(key):
    """Deterministic init matching torch.nn.Linear defaults:
    weights and biases ~ U(-1/sqrt(fan_in), 1/sqrt(fan_in)).
    Weights stored as (in, out) so forward computes x @ W + b
    (== torch's x @ W.T with torch weight of shape (out, in))."""
    def linear(key, fan_in, fan_out):
        kw, kb = jax.random.split(key)
        bound = 1.0 / jnp.sqrt(fan_in)
        w = jax.random.uniform(kw, (fan_in, fan_out), jnp.float32, -bound, bound)
        b = jax.random.uniform(kb, (1, fan_out), jnp.float32, -bound, bound)
        return w, b

    k1, k2, k3 = jax.random.split(key, 3)
    w1, b1 = linear(k1, IN_DIM, HIDDEN)
    w2, b2 = linear(k2, HIDDEN, HIDDEN)
    w3, b3 = linear(k3, HIDDEN, OUT_DIM)
    return (w1, b1, w2, b2, w3, b3)


def qnet_reference_bf16(x, params):
    """Pure-JAX reference with the same bf16-input / f32-accumulate math."""
    w1, b1, w2, b2, w3, b3 = params
    f32 = jnp.float32
    bf = jnp.bfloat16
    h1 = jnp.maximum(
        jnp.dot(x.astype(bf), w1.astype(bf), preferred_element_type=f32) + b1, 0.0)
    h2 = jnp.maximum(
        jnp.dot(h1.astype(bf), w2.astype(bf), preferred_element_type=f32) + b2, 0.0)
    return jnp.dot(h2.astype(bf), w3.astype(bf), preferred_element_type=f32) + b3


def qnet_reference_f32(x, params):
    """Full-f32 reference (matches the PyTorch module's numerics)."""
    w1, b1, w2, b2, w3, b3 = params
    h1 = jnp.maximum(x @ w1 + b1, 0.0)
    h2 = jnp.maximum(h1 @ w2 + b2, 0.0)
    return h2 @ w3 + b3


if __name__ == "__main__":
    key = jax.random.PRNGKey(0)
    k_in, k_params = jax.random.split(key)

    batch = 4
    x = jax.random.normal(k_in, (batch, IN_DIM), dtype=jnp.float32)
    params = init_params(k_params)

    out = qnet_forward(x, params)
    out = jax.block_until_ready(out)
    assert out.shape == (batch, OUT_DIM)

    # Tight check vs. a reference using identical bf16-input math.
    ref_bf16 = qnet_reference_bf16(x, params)
    assert jnp.allclose(out, ref_bf16, atol=1e-3, rtol=1e-3), \
        "mismatch vs bf16-matched reference"

    # Loose check vs. the full-f32 (PyTorch-equivalent) reference.
    ref_f32 = qnet_reference_f32(x, params)
    assert jnp.allclose(out, ref_f32, atol=5e-2, rtol=5e-2), \
        "mismatch vs f32 reference"

    print("KERNEL_OK")
</pallas_src>

<mosaic_0001>
module attributes {stable_mosaic.version = 11 : i64} {
  func.func @qnet_kernel(%arg0: i32, %arg1: memref<8x16xbf16, #tpu.memory_space<vmem>>, %arg2: memref<16x128xbf16, #tpu.memory_space<vmem>>, %arg3: memref<1x128xf32, #tpu.memory_space<vmem>>, %arg4: memref<128x128xbf16, #tpu.memory_space<vmem>>, %arg5: memref<1x128xf32, #tpu.memory_space<vmem>>, %arg6: memref<128x128xbf16, #tpu.memory_space<vmem>>, %arg7: memref<1x128xf32, #tpu.memory_space<vmem>>, %arg8: memref<8x128xf32, #tpu.memory_space<vmem>>) attributes {dimension_semantics = [#tpu.dimension_semantics<parallel>], iteration_bounds = array<i64: 1>, scalar_prefetch = 0 : i64, scratch_operands = 0 : i64, tpu.core_type = #tpu.core_type<tc>, window_params = [{transform_indices = @transform_0, window_bounds = array<i64: 8, 16>}, {pipeline_mode = #tpu.pipeline_mode<synchronous>, transform_indices = @transform_1, window_bounds = array<i64: 16, 128>}, {pipeline_mode = #tpu.pipeline_mode<synchronous>, transform_indices = @transform_2, window_bounds = array<i64: 1, 128>}, {pipeline_mode = #tpu.pipeline_mode<synchronous>, transform_indices = @transform_3, window_bounds = array<i64: 128, 128>}, {pipeline_mode = #tpu.pipeline_mode<synchronous>, transform_indices = @transform_4, window_bounds = array<i64: 1, 128>}, {pipeline_mode = #tpu.pipeline_mode<synchronous>, transform_indices = @transform_5, window_bounds = array<i64: 128, 128>}, {pipeline_mode = #tpu.pipeline_mode<synchronous>, transform_indices = @transform_6, window_bounds = array<i64: 1, 128>}, {transform_indices = @transform_7, window_bounds = array<i64: 8, 128>}]} {
    %c0 = arith.constant 0 : index
    %c0_0 = arith.constant 0 : index
    %0 = vector.load %arg1[%c0, %c0_0] : memref<8x16xbf16, #tpu.memory_space<vmem>>, vector<8x16xbf16>
    %c0_1 = arith.constant 0 : index
    %c0_2 = arith.constant 0 : index
    %1 = vector.load %arg2[%c0_1, %c0_2] : memref<16x128xbf16, #tpu.memory_space<vmem>>, vector<16x128xbf16>
    %cst = arith.constant dense<0.000000e+00> : vector<8x128xf32>
    %2 = tpu.matmul %0, %1, %cst {dimension_numbers = #tpu.dot_dimension_numbers<[1], [0], [0], [1], [0, 0, 1, 1], [], []>} : vector<8x16xbf16>, vector<16x128xbf16>, vector<8x128xf32> -> vector<8x128xf32>
    %c0_3 = arith.constant 0 : index
    %c0_4 = arith.constant 0 : index
    %3 = vector.load %arg3[%c0_3, %c0_4] : memref<1x128xf32, #tpu.memory_space<vmem>>, vector<1x128xf32>
    %4 = vector.broadcast %3 : vector<1x128xf32> to vector<8x128xf32>
    %5 = arith.addf %2, %4 : vector<8x128xf32>
    %cst_5 = arith.constant 0.000000e+00 : f32
    %6 = vector.broadcast %cst_5 : f32 to vector<8x128xf32>
    %7 = arith.maximumf %5, %6 : vector<8x128xf32>
    %8 = arith.truncf %7 : vector<8x128xf32> to vector<8x128xbf16>
    %c0_6 = arith.constant 0 : index
    %c0_7 = arith.constant 0 : index
    %9 = vector.load %arg4[%c0_6, %c0_7] : memref<128x128xbf16, #tpu.memory_space<vmem>>, vector<128x128xbf16>
    %cst_8 = arith.constant dense<0.000000e+00> : vector<8x128xf32>
    %10 = tpu.matmul %8, %9, %cst_8 {dimension_numbers = #tpu.dot_dimension_numbers<[1], [0], [0], [1], [0, 0, 1, 1], [], []>} : vector<8x128xbf16>, vector<128x128xbf16>, vector<8x128xf32> -> vector<8x128xf32>
    %c0_9 = arith.constant 0 : index
    %c0_10 = arith.constant 0 : index
    %11 = vector.load %arg5[%c0_9, %c0_10] : memref<1x128xf32, #tpu.memory_space<vmem>>, vector<1x128xf32>
    %12 = vector.broadcast %11 : vector<1x128xf32> to vector<8x128xf32>
    %13 = arith.addf %10, %12 : vector<8x128xf32>
    %cst_11 = arith.constant 0.000000e+00 : f32
    %14 = vector.broadcast %cst_11 : f32 to vector<8x128xf32>
    %15 = arith.maximumf %13, %14 : vector<8x128xf32>
    %16 = arith.truncf %15 : vector<8x128xf32> to vector<8x128xbf16>
    %c0_12 = arith.constant 0 : index
    %c0_13 = arith.constant 0 : index
    %17 = vector.load %arg6[%c0_12, %c0_13] : memref<128x128xbf16, #tpu.memory_space<vmem>>, vector<128x128xbf16>
    %cst_14 = arith.constant dense<0.000000e+00> : vector<8x128xf32>
    %18 = tpu.matmul %16, %17, %cst_14 {dimension_numbers = #tpu.dot_dimension_numbers<[1], [0], [0], [1], [0, 0, 1, 1], [], []>} : vector<8x128xbf16>, vector<128x128xbf16>, vector<8x128xf32> -> vector<8x128xf32>
    %c0_15 = arith.constant 0 : index
    %c0_16 = arith.constant 0 : index
    %19 = vector.load %arg7[%c0_15, %c0_16] : memref<1x128xf32, #tpu.memory_space<vmem>>, vector<1x128xf32>
    %20 = vector.broadcast %19 : vector<1x128xf32> to vector<8x128xf32>
    %21 = arith.addf %18, %20 : vector<8x128xf32>
    %c0_17 = arith.constant 0 : index
    %c0_18 = arith.constant 0 : index
    %22 = vector.load %arg8[%c0_17, %c0_18] : memref<8x128xf32, #tpu.memory_space<vmem>>, vector<8x128xf32>
    tpu.vector_store %arg8[%c0_17, %c0_18], %21 {strides = array<i32>} : memref<8x128xf32, #tpu.memory_space<vmem>>, vector<8x128xf32>,
    return
  }
  func.func @transform_0(%arg0: i32) -> (i32, i32) {
    %c0_i32 = arith.constant 0 : i32
    %c0_i32_0 = arith.constant 0 : i32
    return %arg0, %c0_i32 : i32, i32
  }
  func.func @transform_1(%arg0: i32) -> (i32, i32) {
    %c0_i32 = arith.constant 0 : i32
    %c0_i32_0 = arith.constant 0 : i32
    %c0_i32_1 = arith.constant 0 : i32
    return %c0_i32, %c0_i32_0 : i32, i32
  }
  func.func @transform_2(%arg0: i32) -> (i32, i32) {
    %c0_i32 = arith.constant 0 : i32
    %c0_i32_0 = arith.constant 0 : i32
    %c0_i32_1 = arith.constant 0 : i32
    return %c0_i32, %c0_i32_0 : i32, i32
  }
  func.func @transform_3(%arg0: i32) -> (i32, i32) {
    %c0_i32 = arith.constant 0 : i32
    %c0_i32_0 = arith.constant 0 : i32
    %c0_i32_1 = arith.constant 0 : i32
    return %c0_i32, %c0_i32_0 : i32, i32
  }
  func.func @transform_4(%arg0: i32) -> (i32, i32) {
    %c0_i32 = arith.constant 0 : i32
    %c0_i32_0 = arith.constant 0 : i32
    %c0_i32_1 = arith.constant 0 : i32
    return %c0_i32, %c0_i32_0 : i32, i32
  }
  func.func @transform_5(%arg0: i32) -> (i32, i32) {
    %c0_i32 = arith.constant 0 : i32
    %c0_i32_0 = arith.constant 0 : i32
    %c0_i32_1 = arith.constant 0 : i32
    return %c0_i32, %c0_i32_0 : i32, i32
  }
  func.func @transform_6(%arg0: i32) -> (i32, i32) {
    %c0_i32 = arith.constant 0 : i32
    %c0_i32_0 = arith.constant 0 : i32
    %c0_i32_1 = arith.constant 0 : i32
    return %c0_i32, %c0_i32_0 : i32, i32
  }
  func.func @transform_7(%arg0: i32) -> (i32, i32) {
    %c0_i32 = arith.constant 0 : i32
    %c0_i32_0 = arith.constant 0 : i32
    return %arg0, %c0_i32 : i32, i32
  }
}

</mosaic_0001>

<bundles_post_ra>
// kernel: qnet_forward.1
= control target key start
LH: loop header
LB: loop body
LE: loop exit
PB: predicated region body
PF: predicated region fallthrough
CT: control target
= control target key end

     0   :  { %v424_v0 = vmov 0.0   ;;  %vm425_vm0 = vmmov 0   ;;  %vm43_vm1 = vcmask 130048   ;;  %s552_s1 = inlined_call_operand.vmem [shape: bf16[16,128], index: 1, kind: input, shape index: {}]   ;;  %s553_s0 = inlined_call_operand.vmem [shape: bf16[8,16], index: 0, kind: input, shape index: {}]   ;;  %s554_s3 = inlined_call_operand.vmem [shape: bf16[128,128], index: 3, kind: input, shape index: {}]   ;;  %s555_s5 = inlined_call_operand.vmem [shape: bf16[128,128], index: 5, kind: input, shape index: {}]   ;;  %s556_s2 = inlined_call_operand.vmem [shape: f32[1,128], index: 2, kind: input, shape index: {}]   ;;  %s557_s4 = inlined_call_operand.vmem [shape: f32[1,128], index: 4, kind: input, shape index: {}]   ;;  %s558_s6 = inlined_call_operand.vmem [shape: f32[1,128], index: 6, kind: input, shape index: {}]   ;;  %s559_s7 = inlined_call_operand.vmem [shape: f32[8,128], index: 7, kind: output, shape index: {}]  }
   0x1   :  { %359 = vmatprep.subr.bf16.mxu0 %v424_v0  ;;  %v407_v1 = vld [vmem:[%s552_s1] sm:$0xff]   ;;  %361 = vmatprep.mubr.msk.bf16.mxu0 %vm425_vm0, %v424_v0  ;;  %v408_v3 = vld [vmem:[%s554_s3 + $0x38] sm:$0xff]   ;;  %v409_v4 = vld [vmem:[%s554_s3 + $0x30] sm:$0xff]  }
   0x2   :  { %v27_v2 = vld [vmem:[%s553_s0] sm:$0xf]  ;;  %365 = vmatprep.subr.bf16.mxu1 %v424_v0  ;;  %381 = vmatprep.mubr.msk.bf16.mxu1 %vm425_vm0, %v424_v0  ;;  %v410_v5 = vld [vmem:[%s554_s3 + $0x28] sm:$0xff]   ;;  %v412_v7 = vld [vmem:[%s554_s3 + $0x18] sm:$0xff]  }
   0x3   :  { %360 = vmatpush3.bf16.msra.mxu0 %v407_v1  ;;  %366 = vmatpush3.bf16.msra.mxu1 %v408_v3  ;;  %v411_v6 = vld [vmem:[%s554_s3 + $0x20] sm:$0xff]   ;;  %v413_v8 = vld [vmem:[%s554_s3 + $0x10] sm:$0xff]   ;;  %v414_v9 = vld [vmem:[%s554_s3 + $0x8] sm:$0xff]  }
   0x4   :  { %385 = vmatprep.subr.bf16.mxu0 %v424_v0  ;;  %367 = vmatprep.subr.bf16.mxu1 %v424_v0  ;;  %v415_v10 = vld [vmem:[%s554_s3] sm:$0xff]   ;;  %v416_v11 = vld [vmem:[%s555_s5 + $0x38] sm:$0xff]   ;;  %v417_v12 = vld [vmem:[%s555_s5 + $0x30] sm:$0xff]  }
   0x5   :  { %v418_v13 = vld [vmem:[%s555_s5 + $0x28] sm:$0xff]   ;;  %v419_v14 = vld [vmem:[%s555_s5 + $0x20] sm:$0xff]   ;;  %v420_v15 = vld [vmem:[%s555_s5 + $0x18] sm:$0xff]  }
   0x6   :  { %362 = vmatmul.mubr.msk.bf16.vlgmr.msra.gmra.mxu0 %vm43_vm1, %v27_v2  ;;  %v421_v16 = vld [vmem:[%s555_s5 + $0x10] sm:$0xff]   ;;  %v318_v17 = vld [vmem:[%s556_s2] ss:$0 sm:$0xff]  ;;  %v422_v25 = vld [vmem:[%s555_s5 + $0x8] sm:$0xff]  }
   0x7   :  { %401 = vmatprep.mubr.msk.bf16.mxu0 %vm425_vm0, %v424_v0  ;;  %368 = vmatpush3.bf16.msra.mxu1 %v409_v4  ;;  %v423_v26 = vld [vmem:[%s555_s5] sm:$0xff]  }
   0x8   :  { %369 = vmatprep.subr.bf16.mxu1 %v424_v0  ;;  %386 = vmatpush3.bf16.msra.mxu0 %v416_v11  ;;  %v321_v27 = vld [vmem:[%s557_s4] ss:$0 sm:$0xff] }
   0x9   :  { %387 = vmatprep.subr.bf16.mxu0 %v424_v0  ;;  %v330_v35 = vld [vmem:[%s558_s6] ss:$0 sm:$0xff] }
   0xb   :  { %370 = vmatpush3.bf16.msra.mxu1 %v410_v5 }
   0xc   :  { %371 = vmatprep.subr.bf16.mxu1 %v424_v0  ;;  %388 = vmatpush3.bf16.msra.mxu0 %v417_v12 }
   0xd   :  { %389 = vmatprep.subr.bf16.mxu0 %v424_v0 }
   0xf   :  { %372 = vmatpush3.bf16.msra.mxu1 %v411_v6 }
  0x10   :  { %373 = vmatprep.subr.bf16.mxu1 %v424_v0  ;;  %390 = vmatpush3.bf16.msra.mxu0 %v418_v13 }
  0x11   :  { %391 = vmatprep.subr.bf16.mxu0 %v424_v0 }
  0x13   :  { %374 = vmatpush3.bf16.msra.mxu1 %v412_v7 }
  0x14   :  { %375 = vmatprep.subr.bf16.mxu1 %v424_v0  ;;  %392 = vmatpush3.bf16.msra.mxu0 %v419_v14 }
  0x15   :  { %393 = vmatprep.subr.bf16.mxu0 %v424_v0 }
  0x17   :  { %376 = vmatpush3.bf16.msra.mxu1 %v413_v8 }
  0x18   :  { %377 = vmatprep.subr.bf16.mxu1 %v424_v0  ;;  %394 = vmatpush3.bf16.msra.mxu0 %v420_v15 }
  0x19   :  { %395 = vmatprep.subr.bf16.mxu0 %v424_v0 }
  0x1b   :  { %378 = vmatpush3.bf16.msra.mxu1 %v414_v9 }
  0x1c   :  { %379 = vmatprep.subr.bf16.mxu1 %v424_v0  ;;  %396 = vmatpush3.bf16.msra.mxu0 %v421_v16 }
  0x1d   :  { %397 = vmatprep.subr.bf16.mxu0 %v424_v0 }
  0x1f   :  { %380 = vmatpush3.bf16.msra.mxu1 %v415_v10 }
  0x20   :  { %398 = vmatpush3.bf16.msra.mxu0 %v422_v25 }
  0x21   :  { %399 = vmatprep.subr.bf16.mxu0 %v424_v0 }
  0x24   :  { %400 = vmatpush3.bf16.msra.mxu0 %v423_v26 }
  0xc6   :  { %v81_v18 = vpop.f32.mrf.mxu0 }
  0xc7   :  { %v82_v19 = vadd.f32 %v318_v17, %v81_v18 }
  0xc8   :  { %v363_v20 = vpop.f32.mrf.mxu0 }
  0xc9   :  { %v87_v21 = vmax.f32 %v82_v19, 0.0 }
  0xca   :  { %v84_v22 = vpop.f32.mrf.mxu0 }
  0xcb   :  { %v88_v23 = vpack.c.bf16 %v87_v21, %v87_v21 }
  0xcc   :  { %v364_v24 = vpop.f32.mrf.mxu0 }
  0xcd   :  { %382 = vmatmul.mubr.bf16.vlgmr.msra.gmra.mxu1 %v88_v23 }
 0x18d   :  { %v194_v28 = vpop.f32.mrf.mxu1 }
 0x18e   :  { %v195_v29 = vadd.f32 %v321_v27, %v194_v28 }
 0x18f   :  { %v383_v30 = vpop.f32.mrf.mxu1 }
 0x190   :  { %v200_v31 = vmax.f32 %v195_v29, 0.0 }
 0x191   :  { %v197_v32 = vpop.f32.mrf.mxu1 }
 0x192   :  { %v201_v33 = vpack.c.bf16 %v200_v31, %v200_v31 }
 0x193   :  { %v384_v34 = vpop.f32.mrf.mxu1 }
 0x194   :  { %402 = vmatmul.mubr.bf16.vlgmr.msra.gmra.mxu0 %v201_v33 }
 0x254   :  { %v307_v36 = vpop.f32.mrf.mxu0 }
 0x255   :  { %v308_v37 = vadd.f32 %v330_v35, %v307_v36 }
 0x256   :  { %v403_v38 = vpop.f32.mrf.mxu0 }
 0x257   :  { %313 = vst [vmem:[%s559_s7] sm:$0xff] %v308_v37 }
 0x258   :  { %v310_v39 = vpop.f32.mrf.mxu0 }
 0x25a   :  { %v404_v40 = vpop.f32.mrf.mxu0 }

</bundles_post_ra>
